<compile_context>
chip_gen: v5e
topology: v5e:2x2
jax: 0.10.0
libtpu: 0.0.40
codegen_flags: <defaults>
</compile_context>

<pallas_src>
import functools

import jax
import jax.numpy as jnp
from jax import lax
from jax.experimental import pallas as pl
from jax.experimental.pallas import tpu as pltpu


def _contrastive_kernel(yh_ref, yh_col_ref, y_col_ref, out_ref,
                        m_ref, l_ref, n_ref, *, precision):
    """One grid step = (batch tile i, column tile j).

    yh_ref:     (TB, N, D)  y_hat rows, resident across the column axis
    yh_col_ref: (TB, TN, D) y_hat rows j*TN .. j*TN+TN-1 (for the exact diag)
    y_col_ref:  (TB, TN, D) y    rows j*TN .. j*TN+TN-1 (columns of cdist)
    out_ref:    (TB, N)     per-row ratio diag / row_sum (written at last j)
    m/l/n_ref:  (TB, N) f32 running row max / row sum / diag numerator
    """
    j = pl.program_id(1)
    n_col = pl.num_programs(1)

    @pl.when(j == 0)
    def _():
        m_ref[...] = jnp.full_like(m_ref, -jnp.inf)
        l_ref[...] = jnp.zeros_like(l_ref)
        n_ref[...] = jnp.zeros_like(n_ref)

    x = yh_ref[...]                                   # (TB, N, D) native dtype
    y = y_col_ref[...]                                # (TB, TN, D)
    xd = yh_col_ref[...]                              # (TB, TN, D)

    # Gram matrix for this column tile on the MXU, contracting the feature dim
    # of both operands (no transpose / relayout of the RHS).
    gram = lax.dot_general(
        x, y,
        dimension_numbers=(((2,), (2,)), ((0,), (0,))),
        preferred_element_type=jnp.float32,
        precision=precision,
    )                                                 # (TB, N, TN)

    xf = x.astype(jnp.float32)
    yf = y.astype(jnp.float32)
    xn = jnp.sum(xf * xf, axis=-1, keepdims=True)     # (TB, N, 1)
    yn = jnp.sum(yf * yf, axis=-1)[:, None, :]        # (TB, 1, TN)
    d = jnp.sqrt(jnp.maximum(xn + yn - 2.0 * gram, 0.0))   # (TB, N, TN)

    # Exact diagonal distances for the rows covered by this column tile; they
    # overwrite the gram-based diagonal so num and den use the same value.
    diff = xd.astype(jnp.float32) - yf                # (TB, TN, D)
    d_diag = jnp.sqrt(jnp.sum(diff * diff, axis=-1))  # (TB, TN)

    tb, n_full, tn = d.shape
    col0 = j * tn
    row_ids = lax.broadcasted_iota(jnp.int32, (1, n_full, tn), 1)
    col_ids = lax.broadcasted_iota(jnp.int32, (1, n_full, tn), 2) + col0
    is_diag = row_ids == col_ids                      # (1, N, TN)
    d = jnp.where(is_diag, d_diag[:, None, :], d)

    # Online (flash-softmax style) accumulation across column tiles.
    m_prev = m_ref[...]
    m_new = jnp.maximum(m_prev, jnp.max(d, axis=-1))  # (TB, N)
    scale = jnp.exp(m_prev - m_new)                   # exp(-inf - x) = 0 at j==0
    p = jnp.exp(d - m_new[..., None])                 # (TB, N, TN)
    l_ref[...] = scale * l_ref[...] + jnp.sum(p, axis=-1)
    n_ref[...] = scale * n_ref[...] + jnp.sum(jnp.where(is_diag, p, 0.0), axis=-1)
    m_ref[...] = m_new

    @pl.when(j == n_col - 1)
    def _():
        out_ref[...] = n_ref[...] / l_ref[...]


def _vmem_budget_bytes():
    """Usable VMEM budget per generation (leave ~25% headroom)."""
    try:
        cap = getattr(pltpu.get_tpu_info(), "vmem_capacity_bytes", None)
    except Exception:
        cap = None
    if not cap:
        cap = 64 * 1024 * 1024       # conservative fallback (v7x-sized)
    return int(cap * 3 // 4)         # ~96 MiB on v5e/v6e, ~48 MiB on v7x


def _vmem_estimate(tb, tn, n, d, itemsize):
    f32 = 4
    temps = 3 * tb * n * tn * f32                       # d, p, masked-p f32 tiles
    masks = 3 * n * tn * 4                              # iota / diag-mask temps
    scratch = 3 * tb * n * f32                          # m, l, n running state
    inputs = 2 * (tb * n * d + 2 * tb * tn * d) * itemsize   # double-buffered
    outputs = 2 * tb * n * f32
    return temps + masks + scratch + inputs + outputs


def _pick_tiles(B, N, D, itemsize, budget):
    """VMEM-aware (TB, TN) choice; prefers >=2 batch grid steps (megacore)."""
    tb_all = [t for t in (64, 32, 16, 8) if B % t == 0] or [B]
    # Tiles giving >= 2 batch steps first (so "parallel" shards across 2 TCs),
    # then by descending size.
    tb_opts = sorted(tb_all, key=lambda t: (B // t < 2, -t))
    tn_opts = [N] + [t for t in (2048, 1024, 512, 256, 128, 64, 32, 16, 8)
                     if t < N and N % t == 0]
    for tb in tb_opts:
        for tn in tn_opts:
            if _vmem_estimate(tb, tn, N, D, itemsize) <= budget:
                return tb, tn
    return tb_opts[-1], tn_opts[-1]     # smallest legal combo; may spill


def contrastive_loss(y_hat, y, eps=1e-8, *, tile_b=None, tile_n=None):
    assert y_hat.shape == y.shape and y_hat.ndim == 3
    B, N, D = y_hat.shape
    itemsize = jnp.dtype(y_hat.dtype).itemsize

    budget = _vmem_budget_bytes()
    TB, TN = _pick_tiles(B, N, D, itemsize, budget)
    if tile_b is not None:
        TB = tile_b
    if tile_n is not None:
        TN = tile_n
    assert B % TB == 0 and N % TN == 0

    # Explicit MXU precision: full f32 accuracy for f32 inputs (matches the
    # reference / exact-diag path); bf16 inputs use the native single-pass MXU.
    precision = (lax.Precision.HIGHEST
                 if jnp.dtype(y_hat.dtype) == jnp.float32 else None)
    kernel = functools.partial(_contrastive_kernel, precision=precision)

    ratios = pl.pallas_call(
        kernel,
        out_shape=jax.ShapeDtypeStruct((B, N), jnp.float32),
        grid_spec=pltpu.PrefetchScalarGridSpec(
            num_scalar_prefetch=0,
            grid=(B // TB, N // TN),
            in_specs=[
                pl.BlockSpec((TB, N, D), lambda i, j: (i, 0, 0)),    # y_hat rows
                pl.BlockSpec((TB, TN, D), lambda i, j: (i, j, 0)),   # y_hat col tile
                pl.BlockSpec((TB, TN, D), lambda i, j: (i, j, 0)),   # y col tile
            ],
            out_specs=pl.BlockSpec((TB, N), lambda i, j: (i, 0)),
            scratch_shapes=[pltpu.VMEM((TB, N), jnp.float32)] * 3,   # m, l, n
        ),
        compiler_params=pltpu.CompilerParams(
            dimension_semantics=("parallel", "arbitrary"),
            vmem_limit_bytes=budget,
        ),
    )(y_hat, y_hat, y)

    # Final reduction + eps in the wrapper (no serial in-kernel accumulator).
    return jnp.mean(ratios) + eps


def _reference_loss(y_hat, y, eps=1e-8):
    # Pure-JAX reference mirroring the PyTorch module.
    d = jnp.sqrt(
        jnp.maximum(
            jnp.sum((y_hat[:, :, None, :] - y[:, None, :, :]) ** 2, axis=-1), 0.0
        )
    )
    dist_tensor = jnp.exp(d)                              # (B, N, N)
    diag = jnp.diagonal(dist_tensor, axis1=1, axis2=2)    # (B, N)
    return jnp.mean(diag / jnp.sum(dist_tensor, axis=2)) + eps


if __name__ == "__main__":
    key = jax.random.PRNGKey(0)

    # Small demo shape (single grid step).
    B, N, D = 2, 8, 32
    k1, k2 = jax.random.split(key)
    y_hat = jax.random.normal(k1, (B, N, D), dtype=jnp.float32)
    y = jax.random.normal(k2, (B, N, D), dtype=jnp.float32)
    loss = jax.block_until_ready(contrastive_loss(y_hat, y))
    ref = _reference_loss(y_hat, y)
    assert jnp.allclose(loss, ref, rtol=1e-5, atol=1e-6), (loss, ref)

    # Exercise the column-tiled online-softmax path and the batch grid axis
    # (grid = (2, 2)) at still-small shapes by forcing TN < N.
    B2, N2, D2 = 16, 32, 32
    k3, k4 = jax.random.split(k2)
    y_hat2 = jax.random.normal(k3, (B2, N2, D2), dtype=jnp.float32)
    y2 = jax.random.normal(k4, (B2, N2, D2), dtype=jnp.float32)
    loss2 = jax.block_until_ready(contrastive_loss(y_hat2, y2, tile_b=8, tile_n=16))
    ref2 = _reference_loss(y_hat2, y2)
    assert jnp.allclose(loss2, ref2, rtol=1e-5, atol=1e-6), (loss2, ref2)

    print("KERNEL_OK")
</pallas_src>

<mosaic_0001>
module attributes {stable_mosaic.version = 11 : i64} {
  func.func @_contrastive_kernel(%arg0: i32, %arg1: i32, %arg2: memref<2x8x32xf32, #tpu.memory_space<vmem>>, %arg3: memref<2x8x32xf32, #tpu.memory_space<vmem>>, %arg4: memref<2x8x32xf32, #tpu.memory_space<vmem>>, %arg5: memref<2x8xf32, #tpu.memory_space<vmem>>, %arg6: memref<2x8xf32, #tpu.memory_space<vmem>>, %arg7: memref<2x8xf32, #tpu.memory_space<vmem>>, %arg8: memref<2x8xf32, #tpu.memory_space<vmem>>) attributes {dimension_semantics = [#tpu.dimension_semantics<parallel>, #tpu.dimension_semantics<arbitrary>], iteration_bounds = array<i64: 1, 1>, scalar_prefetch = 0 : i64, scratch_operands = 3 : i64, tpu.core_type = #tpu.core_type<tc>, window_params = [{transform_indices = @transform_0, window_bounds = array<i64: 2, 8, 32>}, {transform_indices = @transform_1, window_bounds = array<i64: 2, 8, 32>}, {transform_indices = @transform_2, window_bounds = array<i64: 2, 8, 32>}, {transform_indices = @transform_3, window_bounds = array<i64: 2, 8>}]} {
    %c0_i32 = arith.constant 0 : i32
    %0 = arith.cmpi eq, %arg1, %c0_i32 : i32
    %1 = arith.extui %0 : i1 to i32
    %c0_i32_0 = arith.constant 0 : i32
    %2 = arith.cmpi ne, %1, %c0_i32_0 : i32
    scf.if %2 {
      %cst_32 = arith.constant 0xFF800000 : f32
      %65 = vector.broadcast %cst_32 : f32 to vector<2x8xf32>
      %c0_33 = arith.constant 0 : index
      %c0_34 = arith.constant 0 : index
      %66 = vector.load %arg6[%c0_33, %c0_34] : memref<2x8xf32, #tpu.memory_space<vmem>>, vector<2x8xf32>
      tpu.vector_store %arg6[%c0_33, %c0_34], %65 {strides = array<i32>} : memref<2x8xf32, #tpu.memory_space<vmem>>, vector<2x8xf32>,
      %cst_35 = arith.constant 0.000000e+00 : f32
      %67 = vector.broadcast %cst_35 : f32 to vector<2x8xf32>
      %c0_36 = arith.constant 0 : index
      %c0_37 = arith.constant 0 : index
      %68 = vector.load %arg7[%c0_36, %c0_37] : memref<2x8xf32, #tpu.memory_space<vmem>>, vector<2x8xf32>
      tpu.vector_store %arg7[%c0_36, %c0_37], %67 {strides = array<i32>} : memref<2x8xf32, #tpu.memory_space<vmem>>, vector<2x8xf32>,
      %cst_38 = arith.constant 0.000000e+00 : f32
      %69 = vector.broadcast %cst_38 : f32 to vector<2x8xf32>
      %c0_39 = arith.constant 0 : index
      %c0_40 = arith.constant 0 : index
      %70 = vector.load %arg8[%c0_39, %c0_40] : memref<2x8xf32, #tpu.memory_space<vmem>>, vector<2x8xf32>
      tpu.vector_store %arg8[%c0_39, %c0_40], %69 {strides = array<i32>} : memref<2x8xf32, #tpu.memory_space<vmem>>, vector<2x8xf32>,
    } else {
    }
    %c0 = arith.constant 0 : index
    %c0_1 = arith.constant 0 : index
    %c0_2 = arith.constant 0 : index
    %3 = vector.load %arg2[%c0, %c0_1, %c0_2] : memref<2x8x32xf32, #tpu.memory_space<vmem>>, vector<2x8x32xf32>
    %c0_3 = arith.constant 0 : index
    %c0_4 = arith.constant 0 : index
    %c0_5 = arith.constant 0 : index
    %4 = vector.load %arg4[%c0_3, %c0_4, %c0_5] : memref<2x8x32xf32, #tpu.memory_space<vmem>>, vector<2x8x32xf32>
    %c0_6 = arith.constant 0 : index
    %c0_7 = arith.constant 0 : index
    %c0_8 = arith.constant 0 : index
    %5 = vector.load %arg3[%c0_6, %c0_7, %c0_8] : memref<2x8x32xf32, #tpu.memory_space<vmem>>, vector<2x8x32xf32>
    %cst = arith.constant dense<0.000000e+00> : vector<2x8x8xf32>
    %6 = tpu.matmul %3, %4, %cst {dimension_numbers = #tpu.dot_dimension_numbers<[2], [2], [1], [1], [0, 0, 0, 1, 1, 1], [0], [0]>, precision = #tpu.contract_precision<fp32>} : vector<2x8x32xf32>, vector<2x8x32xf32>, vector<2x8x8xf32> -> vector<2x8x8xf32>
    %7 = arith.mulf %3, %3 : vector<2x8x32xf32>
    %cst_9 = arith.constant dense<0.000000e+00> : vector<2x8xf32>
    %8 = vector.multi_reduction <add>, %7, %cst_9 [2] : vector<2x8x32xf32> to vector<2x8xf32>
    %9 = vector.shape_cast %8 : vector<2x8xf32> to vector<2x8x1xf32>
    %10 = arith.mulf %4, %4 : vector<2x8x32xf32>
    %cst_10 = arith.constant dense<0.000000e+00> : vector<2x8xf32>
    %11 = vector.multi_reduction <add>, %10, %cst_10 [2] : vector<2x8x32xf32> to vector<2x8xf32>
    %12 = vector.shape_cast %11 : vector<2x8xf32> to vector<2x1x8xf32>
    %13 = vector.broadcast %9 : vector<2x8x1xf32> to vector<2x8x8xf32>
    %14 = vector.broadcast %12 : vector<2x1x8xf32> to vector<2x8x8xf32>
    %15 = arith.addf %13, %14 : vector<2x8x8xf32>
    %cst_11 = arith.constant 2.000000e+00 : f32
    %16 = vector.broadcast %cst_11 : f32 to vector<2x8x8xf32>
    %17 = arith.mulf %16, %6 : vector<2x8x8xf32>
    %18 = arith.subf %15, %17 : vector<2x8x8xf32>
    %cst_12 = arith.constant 0.000000e+00 : f32
    %19 = vector.broadcast %cst_12 : f32 to vector<2x8x8xf32>
    %20 = arith.maximumf %18, %19 : vector<2x8x8xf32>
    %21 = math.sqrt %20 : vector<2x8x8xf32>
    %22 = arith.subf %5, %4 : vector<2x8x32xf32>
    %23 = arith.mulf %22, %22 : vector<2x8x32xf32>
    %cst_13 = arith.constant dense<0.000000e+00> : vector<2x8xf32>
    %24 = vector.multi_reduction <add>, %23, %cst_13 [2] : vector<2x8x32xf32> to vector<2x8xf32>
    %25 = math.sqrt %24 : vector<2x8xf32>
    %c8_i32 = arith.constant 8 : i32
    %26 = arith.muli %arg1, %c8_i32 : i32
    %27 = tpu.iota {dimensions = array<i32: 1>} : vector<1x8x8xi32>
    %28 = tpu.iota {dimensions = array<i32: 2>} : vector<1x8x8xi32>
    %29 = vector.broadcast %26 : i32 to vector<1x8x8xi32>
    %30 = arith.addi %28, %29 : vector<1x8x8xi32>
    %31 = arith.cmpi eq, %27, %30 : vector<1x8x8xi32>
    %32 = vector.shape_cast %25 : vector<2x8xf32> to vector<2x1x8xf32>
    %33 = vector.shape_cast %31 : vector<1x8x8xi1> to vector<1x8x8xi1>
    %34 = vector.broadcast %33 : vector<1x8x8xi1> to vector<2x8x8xi1>
    %35 = vector.shape_cast %32 : vector<2x1x8xf32> to vector<2x1x8xf32>
    %36 = vector.broadcast %35 : vector<2x1x8xf32> to vector<2x8x8xf32>
    %37 = arith.select %34, %36, %21 : vector<2x8x8xi1>, vector<2x8x8xf32>
    %c0_14 = arith.constant 0 : index
    %c0_15 = arith.constant 0 : index
    %38 = vector.load %arg6[%c0_14, %c0_15] : memref<2x8xf32, #tpu.memory_space<vmem>>, vector<2x8xf32>
    %cst_16 = arith.constant dense<0xFF800000> : vector<2x8xf32>
    %39 = vector.multi_reduction <maximumf>, %37, %cst_16 [2] : vector<2x8x8xf32> to vector<2x8xf32>
    %40 = arith.maximumf %38, %39 : vector<2x8xf32>
    %41 = arith.subf %38, %40 : vector<2x8xf32>
    %42 = math.exp %41 : vector<2x8xf32>
    %43 = vector.shape_cast %40 : vector<2x8xf32> to vector<2x8x1xf32>
    %44 = vector.broadcast %43 : vector<2x8x1xf32> to vector<2x8x8xf32>
    %45 = arith.subf %37, %44 : vector<2x8x8xf32>
    %46 = math.exp %45 : vector<2x8x8xf32>
    %c0_17 = arith.constant 0 : index
    %c0_18 = arith.constant 0 : index
    %47 = vector.load %arg7[%c0_17, %c0_18] : memref<2x8xf32, #tpu.memory_space<vmem>>, vector<2x8xf32>
    %48 = arith.mulf %42, %47 : vector<2x8xf32>
    %cst_19 = arith.constant dense<0.000000e+00> : vector<2x8xf32>
    %49 = vector.multi_reduction <add>, %46, %cst_19 [2] : vector<2x8x8xf32> to vector<2x8xf32>
    %50 = arith.addf %48, %49 : vector<2x8xf32>
    %c0_20 = arith.constant 0 : index
    %c0_21 = arith.constant 0 : index
    %51 = vector.load %arg7[%c0_20, %c0_21] : memref<2x8xf32, #tpu.memory_space<vmem>>, vector<2x8xf32>
    tpu.vector_store %arg7[%c0_20, %c0_21], %50 {strides = array<i32>} : memref<2x8xf32, #tpu.memory_space<vmem>>, vector<2x8xf32>,
    %c0_22 = arith.constant 0 : index
    %c0_23 = arith.constant 0 : index
    %52 = vector.load %arg8[%c0_22, %c0_23] : memref<2x8xf32, #tpu.memory_space<vmem>>, vector<2x8xf32>
    %53 = arith.mulf %42, %52 : vector<2x8xf32>
    %cst_24 = arith.constant 0.000000e+00 : f32
    %54 = vector.shape_cast %31 : vector<1x8x8xi1> to vector<1x8x8xi1>
    %55 = vector.broadcast %54 : vector<1x8x8xi1> to vector<2x8x8xi1>
    %56 = vector.broadcast %cst_24 : f32 to vector<2x8x8xf32>
    %57 = arith.select %55, %46, %56 : vector<2x8x8xi1>, vector<2x8x8xf32>
    %cst_25 = arith.constant dense<0.000000e+00> : vector<2x8xf32>
    %58 = vector.multi_reduction <add>, %57, %cst_25 [2] : vector<2x8x8xf32> to vector<2x8xf32>
    %59 = arith.addf %53, %58 : vector<2x8xf32>
    %c0_26 = arith.constant 0 : index
    %c0_27 = arith.constant 0 : index
    %60 = vector.load %arg8[%c0_26, %c0_27] : memref<2x8xf32, #tpu.memory_space<vmem>>, vector<2x8xf32>
    tpu.vector_store %arg8[%c0_26, %c0_27], %59 {strides = array<i32>} : memref<2x8xf32, #tpu.memory_space<vmem>>, vector<2x8xf32>,
    %c0_28 = arith.constant 0 : index
    %c0_29 = arith.constant 0 : index
    %61 = vector.load %arg6[%c0_28, %c0_29] : memref<2x8xf32, #tpu.memory_space<vmem>>, vector<2x8xf32>
    tpu.vector_store %arg6[%c0_28, %c0_29], %40 {strides = array<i32>} : memref<2x8xf32, #tpu.memory_space<vmem>>, vector<2x8xf32>,
    %c0_i32_30 = arith.constant 0 : i32
    %62 = arith.cmpi eq, %arg1, %c0_i32_30 : i32
    %63 = arith.extui %62 : i1 to i32
    %c0_i32_31 = arith.constant 0 : i32
    %64 = arith.cmpi ne, %63, %c0_i32_31 : i32
    scf.if %64 {
      %c0_32 = arith.constant 0 : index
      %c0_33 = arith.constant 0 : index
      %65 = vector.load %arg8[%c0_32, %c0_33] : memref<2x8xf32, #tpu.memory_space<vmem>>, vector<2x8xf32>
      %c0_34 = arith.constant 0 : index
      %c0_35 = arith.constant 0 : index
      %66 = vector.load %arg7[%c0_34, %c0_35] : memref<2x8xf32, #tpu.memory_space<vmem>>, vector<2x8xf32>
      %67 = arith.divf %65, %66 : vector<2x8xf32>
      %c0_36 = arith.constant 0 : index
      %c0_37 = arith.constant 0 : index
      %68 = vector.load %arg5[%c0_36, %c0_37] : memref<2x8xf32, #tpu.memory_space<vmem>>, vector<2x8xf32>
      tpu.vector_store %arg5[%c0_36, %c0_37], %67 {strides = array<i32>} : memref<2x8xf32, #tpu.memory_space<vmem>>, vector<2x8xf32>,
    } else {
    }
    return
  }
  func.func @transform_0(%arg0: i32, %arg1: i32) -> (i32, i32, i32) {
    %c0_i32 = arith.constant 0 : i32
    %c0_i32_0 = arith.constant 0 : i32
    %c0_i32_1 = arith.constant 0 : i32
    return %arg0, %c0_i32, %c0_i32_0 : i32, i32, i32
  }
  func.func @transform_1(%arg0: i32, %arg1: i32) -> (i32, i32, i32) {
    %c0_i32 = arith.constant 0 : i32
    %c0_i32_0 = arith.constant 0 : i32
    return %arg0, %arg1, %c0_i32 : i32, i32, i32
  }
  func.func @transform_2(%arg0: i32, %arg1: i32) -> (i32, i32, i32) {
    %c0_i32 = arith.constant 0 : i32
    %c0_i32_0 = arith.constant 0 : i32
    return %arg0, %arg1, %c0_i32 : i32, i32, i32
  }
  func.func @transform_3(%arg0: i32, %arg1: i32) -> (i32, i32) {
    %c0_i32 = arith.constant 0 : i32
    %c0_i32_0 = arith.constant 0 : i32
    return %arg0, %c0_i32 : i32, i32
  }
}

</mosaic_0001>

<bundles_post_ra>
// kernel: tpu_custom_call.1
= control target key start
LH: loop header
LB: loop body
LE: loop exit
PB: predicated region body
PF: predicated region fallthrough
CT: control target
= control target key end

     0   :  { %8 = vsyncpa [#allocation6], 0  ;;  %s873_s0 = inlined_call_operand.hbm [shape: f32[2,8,32], index: 0, kind: input, shape index: {}]   ;;  %s874_s1 = inlined_call_operand.hbm [shape: f32[2,8,32], index: 1, kind: input, shape index: {}]   ;;  %s875_s2 = inlined_call_operand.hbm [shape: f32[2,8,32], index: 2, kind: input, shape index: {}]   ;;  %s876_s3 = inlined_call_operand.hbm [shape: f32[2,8], index: 3, kind: output, shape index: {}]  }
   0x1   :  { %9 = vsyncpa [#allocation9], 0 }
   0x2   :  { %10 = vsyncpa [#allocation7], 0  ;;  %s28_s14 = sshll.u32 %s874_s1, 4  ;;  %s759_s15 = smov [#allocation8]   ;;  %s29_s14 = int_to_ptr.hbm [resolvable:$true] %s28_s14 }
   0x3   :  { %s30_s16 = sshll.u32 %s759_s15, 4  ;;  %s15_s19 = sshll.u32 %s873_s0, 4  ;;  %s31_s16 = int_to_ptr.vmem [resolvable:$true] %s30_s16  ;;  %s16_s19 = int_to_ptr.hbm [resolvable:$true] %s15_s19 }
   0x4   :  { %s760_s20 = smov 128   ;;  %s761_s21 = smov 8  }
   0x5   :  { %36 = dma.hbm_to_vmem [thread:$0]  %s29_s14, 256, %s31_s16, [#allocation9], %s760_s20, %s760_s20, %s761_s21  }
   0x6   :  { %s762_s22 = smov [#allocation5]   ;;  %s41_s26 = sshll.u32 %s875_s2, 4  ;;  %s42_s26 = int_to_ptr.hbm [resolvable:$true] %s41_s26 }
   0x7   :  { %s17_s23 = sshll.u32 %s762_s22, 4  ;;  %s763_s1 = smov [#allocation10]   ;;  %s18_s23 = int_to_ptr.vmem [resolvable:$true] %s17_s23 }
   0x8   :  { %23 = dma.hbm_to_vmem [thread:$0]  %s16_s19, 256, %s18_s23, [#allocation6], %s760_s20, %s760_s20, %s761_s21  }
   0x9   :  { %s43_s27 = sshll.u32 %s763_s1, 4  ;;  %s44_s27 = int_to_ptr.vmem [resolvable:$true] %s43_s27 }
   0xa   :  { %49 = dma.hbm_to_vmem [thread:$0]  %s42_s26, 256, %s44_s27, [#allocation9], %s760_s20, %s760_s20, %s761_s21  }
   0xb   :  { %753 = dma.done.wait [#allocation6], 256  }
   0xc   :  { %754 = vsyncadd [#allocation6], 4294967040 }
   0xd   :  { %755 = dma.done.wait [#allocation9], 512  }
   0xe   :  { %756 = vsyncadd [#allocation9], 4294966784  ;;  %vm76_vm0 = vcmask 261120   ;;  %v72_v0 = vld [vmem:[#allocation10] sm:$0xff]  ;;  %v73_v2 = vld [vmem:[#allocation10 + $0x8] sm:$0xff]  ;;  %v399_v46 = vlaneseq  ;;  %vm519_vm6 = vcmask 64512  }
   0xf   :  { %v70_v1 = vld [vmem:[#allocation5] sm:$0xff]  ;;  %v81_v3 = vsel %vm76_vm0, %v72_v0, 0  ;;  %v233_v5 = vsel %vm76_vm0, %v73_v2, 0  ;;  %v71_v6 = vld [vmem:[#allocation5 + $0x8] sm:$0xff]  ;;  %v74_v7 = vld [vmem:[#allocation8] sm:$0xff]  ;;  %v389_v8 = vmul.f32 %v72_v0, %v72_v0  ;;  %v390_v30 = vmul.f32 %v73_v2, %v73_v2  ;;  %s766_s0 = smov [#allocation11]  }
  0x10   :  { %v78_v4 = vsel %vm76_vm0, %v70_v1, 0  ;;  %v98_v9 = vand.u32 4294901760, %v81_v3  ;;  %v250_v11 = vand.u32 4294901760, %v233_v5  ;;  %v230_v12 = vsel %vm76_vm0, %v71_v6, 0  ;;  %v75_v15 = vld [vmem:[#allocation8 + $0x8] sm:$0xff]  ;;  %s618_s2 = sshll.u32 %s766_s0, 4  ;;  %s619_s2 = int_to_ptr.vmem [resolvable:$true] %s618_s2 }
  0x11   :  { %v100_v10 = vand.u32 4294901760, %v78_v4  ;;  %v252_v13 = vand.u32 4294901760, %v230_v12  ;;  %v456_v14 = vsub.f32 %v74_v7, %v72_v0  ;;  %v391_v16 = vsel %vm76_vm0, %v389_v8, 0.0  ;;  %s620_s30 = sshll.u32 %s876_s3, 4  ;;  %s621_s30 = int_to_ptr.hbm [resolvable:$true] %s620_s30 }
  0x12   :  { %v125_v17 = vsub.f32 %v81_v3, %v98_v9  ;;  %175 = vmatpush.xpose.msra.mxu3 %v98_v9  ;;  %99 = vmatpush.xpose.msra.mxu0 %v98_v9  ;;  %v277_v19 = vsub.f32 %v233_v5, %v250_v11  ;;  %v381_v22 = vmul.f32 %v70_v1, %v70_v1  ;;  %v394_v40 = vsel %vm76_vm0, %v390_v30, 0.0 }
  0x13   :  { %v101_v18 = vsub.f32 %v78_v4, %v100_v10  ;;  %v253_v20 = vsub.f32 %v230_v12, %v252_v13  ;;  %v458_v21 = vmul.f32 %v456_v14, %v456_v14  ;;  %392 = vadd.xlane.f32.xlu0 %v391_v16  ;;  %v457_v26 = vsub.f32 %v75_v15, %v73_v2 }
  0x14   :  { %152 = vmatpush.xpose.msra.mxu2 %v125_v17  ;;  %v126_v24 = vand.u32 4294901760, %v125_v17  ;;  %v278_v25 = vand.u32 4294901760, %v277_v19  ;;  %v383_v29 = vsel %vm76_vm0, %v381_v22, 0.0  ;;  %v382_v39 = vmul.f32 %v71_v6, %v71_v6 }
  0x15   :  { %v102_v23 = vand.u32 4294901760, %v101_v18  ;;  %v254_v27 = vand.u32 4294901760, %v253_v20  ;;  %v460_v28 = vsel %vm76_vm0, %v458_v21, 0.0  ;;  %v459_v38 = vmul.f32 %v457_v26, %v457_v26  ;;  %384 = vadd.xlane.f32.xlu1 %v383_v29 }
  0x16   :  { %v127_v32 = vsub.f32 %v125_v17, %v126_v24  ;;  %201 = vmatpush.xpose.msrb.mxu0 %v126_v24  ;;  %v279_v33 = vsub.f32 %v277_v19, %v278_v25  ;;  %461 = vadd.xlane.f32.xlu2 %v460_v28  ;;  %v386_v43 = vsel %vm76_vm0, %v382_v39, 0.0  ;;  %v809_v51 = vand.u32 127, %v399_v46 }
  0x17   :  { %179 = vmatmul.f32.vlgmr.msra.gmra.mxu3 %v102_v23  ;;  %v103_v31 = vsub.f32 %v101_v18, %v102_v23  ;;  %155 = vmatmul.f32.vlgmr.msra.gmra.mxu2 %v101_v18  ;;  %v255_v34 = vsub.f32 %v253_v20, %v254_v27  ;;  %v463_v42 = vsel %vm76_vm0, %v459_v38, 0.0  ;;  %v811_v55 = vshrl.u32 %v399_v46, 7 }
  0x18   :  { %251 = vmatpush.xpose.msrb.mxu2 %v250_v11  ;;  %v128_v36 = vand.u32 4294901760, %v127_v32  ;;  %v280_v37 = vand.u32 4294901760, %v279_v33  ;;  %vm66_vm11 = vcmask 58368   ;;  %vm403_vm12 = vcmask 1041409  }
  0x19   :  { %v104_v35 = vand.u32 4294901760, %v103_v31  ;;  %v256_v41 = vand.u32 4294901760, %v255_v34  ;;  %640 = vset.pattern.permute.xlu0 %v811_v55  ;;  %639 = vset.pattern.permute.xlu2 %v811_v55  ;;  %vm495_vm4 = vcmp.eq.s32.totalorder %v811_v55, %v809_v51 }
  0x1a   :  { %129 = vmatpush.xpose.msra.mxu1 %v128_v36  ;;  %281 = vmatpush.xpose.msrb.mxu3 %v280_v37 }
  0x1b   :  { %105 = vmatmul.f32.vlgmr.msra.gmra.mxu0 %v104_v35  ;;  %395 = vadd.xlane.f32.xlu0 %v394_v40 }
  0x1c   :  { %353 = vmatpush.xpose.msra.mxu2 %v278_v25  ;;  %304 = vmatpush.xpose.msra.mxu0 %v277_v19 }
  0x1d   :  { %131 = vmatmul.f32.vlgmr.msra.gmra.mxu1 %v100_v10  ;;  %387 = vadd.xlane.f32.xlu1 %v386_v43 }
  0x1e   :  { %223 = vmatpush.xpose.msrb.mxu1 %v98_v9  ;;  %375 = vmatpush.xpose.msra.mxu3 %v250_v11 }
  0x1f   :  { %283 = vmatmul.f32.vlgmr.msrb.gmra.mxu3 %v252_v13  ;;  %257 = vmatmul.f32.vlgmr.msrb.gmra.mxu2 %v256_v41 }
  0x20   :  { %464 = vadd.xlane.f32.xlu2 %v463_v42 }
  0x22   :  { %327 = vmatpush.xpose.msra.mxu1 %v250_v11 }
  0x23   :  { %203 = vmatmul.f32.vlgmr.msrb.gmra.mxu0 %v100_v10 }
  0x25   :  { %225 = vmatmul.f32.vlgmr.msrb.gmra.mxu1 %v100_v10 }
  0x27   :  { %377 = vmatmul.f32.vlgmr.msra.gmra.mxu3 %v252_v13  ;;  %355 = vmatmul.f32.vlgmr.msra.gmra.mxu2 %v252_v13 }
  0x2b   :  { %307 = vmatmul.f32.vlgmr.msra.gmra.mxu0 %v253_v20 }
  0x2d   :  { %331 = vmatmul.f32.vlgmr.msra.gmra.mxu1 %v254_v27 }
  0x86   :  { %v393_v53 = vpop.xlane.xlu0 %392 }
  0x87   :  { %v401_v59 = vperm.slane %v393_v53, %v809_v51 }
  0x88   :  { %v385_v61 = vpop.xlane.xlu1 %384 }
  0x89   :  { %v806_v44 = vpop.xlane.xlu2 %461  ;;  %v424_v4 = vadd.f32 %v401_v59, %v385_v61 }
  0x8a   :  { %641 = vrsqrt.f32 %v806_v44  ;;  %vm473_vm1 = vcmp.eq.f32.partialorder %v806_v44, inf  ;;  %v476_v36 = vand.u32 2147483648, %v806_v44  ;;  %vm475_vm2 = vcmp.eq.f32.partialorder %v806_v44, 0.0 }
  0x8e   :  { %v396_v11 = vpop.xlane.xlu0 %395 }
  0x8f   :  { %v402_v17 = vperm.slane %v396_v11, %v809_v51 }
  0x90   :  { %v642_v52 = vpop.eup %641  ;;  %v388_v21 = vpop.xlane.xlu1 %387 }
  0x91   :  { %v467_v56 = vmul.f32 %v642_v52, %v806_v44  ;;  %v425_v24 = vadd.f32 %v402_v17, %v388_v21 }
  0x93   :  { %v815_v60 = vpop.xlane.xlu2 %464  ;;  %v468_v2 = vmul.f32 %v642_v52, %v467_v56 }
  0x94   :  { %643 = vrsqrt.f32 %v815_v60  ;;  %vm485_vm7 = vcmp.eq.f32.partialorder %v815_v60, inf  ;;  %vm487_vm8 = vcmp.eq.f32.partialorder %v815_v60, 0.0 }
  0x95   :  { %v469_v7 = vmul.f32 0.5, %v468_v2 }
  0x97   :  { %v470_v18 = vsub.f32 1.5, %v469_v7 }
  0x98   :  { %v106_v45 = vpop.f32.mrf.mxu0 }
  0x99   :  { %v471_v25 = vmul.f32 %v642_v52, %v470_v18 }
  0x9a   :  { %v180_v47 = vpop.f32.mrf.mxu3  ;;  %v132_v48 = vpop.f32.mrf.mxu1 }
  0x9b   :  { %v156_v49 = vpop.f32.mrf.mxu2  ;;  %v133_v50 = vadd.f32 %v132_v48, %v106_v45  ;;  %v644_v12 = vpop.eup %643  ;;  %v472_v31 = vmul.f32 %v471_v25, %v806_v44 }
  0x9c   :  { %v479_v19 = vmul.f32 %v644_v12, %v815_v60 }
  0x9d   :  { %v157_v54 = vadd.f32 %v156_v49, %v133_v50  ;;  %v474_v37 = vsel %vm473_vm1, %v806_v44, %v472_v31 }
  0x9e   :  { %v480_v26 = vmul.f32 %v644_v12, %v479_v19  ;;  %v477_v41 = vsel %vm475_vm2, %v476_v36, %v474_v37 }
  0x9f   :  { %v181_v57 = vadd.f32 %v180_v47, %v157_v54  ;;  %v500_v47 = vperm.slane %v477_v41, %v809_v51 }
  0xa0   :  { %v204_v58 = vpop.f32.mrf.mxu0  ;;  %v481_v32 = vmul.f32 0.5, %v480_v26 }
  0xa1   :  { %v205_v62 = vadd.f32 %v204_v58, %v181_v57  ;;  %v488_v57 = vand.u32 2147483648, %v815_v60 }
  0xa2   :  { %v284_v63 = vpop.f32.mrf.mxu3  ;;  %v226_v0 = vpop.f32.mrf.mxu1  ;;  %v482_v39 = vsub.f32 1.5, %v481_v32 }
  0xa3   :  { %v258_v1 = vpop.f32.mrf.mxu2  ;;  %v227_v3 = vadd.f32 %v226_v0, %v205_v62 }
  0xa4   :  { %v285_v5 = vadd.f32 %v284_v63, %v258_v1  ;;  %v483_v43 = vmul.f32 %v644_v12, %v482_v39 }
  0xa5   :  { %v426_v6 = vmul.f32 2.0, %v227_v3 }
  0xa6   :  { %v484_v53 = vmul.f32 %v483_v43, %v815_v60 }
  0xa7   :  { %v428_v8 = vsub.f32 %v424_v4, %v426_v6  ;;  %v764_v6 = vmov -inf  }
  0xa8   :  { %v308_v9 = vpop.f32.mrf.mxu0  ;;  %v486_v59 = vsel %vm485_vm7, %v815_v60, %v484_v53  ;;  %67 = vst.msk [vmem:[#allocation2] sm:$0x3] %vm66_vm11, %v764_v6  ;;  %v765_v60 = vmov 0.0  }
  0xa9   :  { %v309_v10 = vadd.f32 %v308_v9, %v285_v5  ;;  %v430_v13 = vmax.f32 %v428_v8, 0.0  ;;  %v489_v62 = vsel %vm487_vm8, %v488_v57, %v486_v59  ;;  %68 = vst.msk [vmem:[#allocation3] sm:$0x3] %vm66_vm11, %v765_v60 }
  0xaa   :  { %v332_v14 = vpop.f32.mrf.mxu1  ;;  %v378_v20 = vpop.f32.mrf.mxu3  ;;  %v501_v2 = vperm.slane %v489_v62, %v809_v51  ;;  %69 = vst.msk [vmem:[#allocation4] sm:$0x3] %vm66_vm11, %v765_v60 }
  0xab   :  { %v356_v15 = vpop.f32.mrf.mxu2  ;;  %645 = vrsqrt.f32 %v430_v13  ;;  %v333_v16 = vadd.f32 %v332_v14, %v309_v10  ;;  %vm439_vm3 = vcmp.eq.f32.partialorder %v430_v13, inf  ;;  %v442_v46 = vand.u32 2147483648, %v430_v13 }
  0xac   :  { %vm441_vm5 = vcmp.eq.f32.partialorder %v430_v13, 0.0 }
  0xad   :  { %v357_v22 = vadd.f32 %v356_v15, %v333_v16 }
  0xaf   :  { %v379_v23 = vadd.f32 %v378_v20, %v357_v22  ;;  %v518_v10 = vld [vmem:[#allocation2] sm:$0x3] }
  0xb1   :  { %v646_v27 = vpop.eup %645  ;;  %v427_v28 = vmul.f32 2.0, %v379_v23  ;;  %v573_v41 = vld [vmem:[#allocation4] sm:$0x3] }
  0xb2   :  { %v433_v29 = vmul.f32 %v646_v27, %v430_v13 }
  0xb3   :  { %v429_v30 = vsub.f32 %v425_v24, %v427_v28 }
  0xb4   :  { %v434_v33 = vmul.f32 %v646_v27, %v433_v29 }
  0xb5   :  { %v431_v34 = vmax.f32 %v429_v30, 0.0 }
  0xb6   :  { %v435_v35 = vmul.f32 0.5, %v434_v33 }
  0xb7   :  { %647 = vrsqrt.f32 %v431_v34  ;;  %vm451_vm9 = vcmp.eq.f32.partialorder %v431_v34, inf  ;;  %v454_v0 = vand.u32 2147483648, %v431_v34  ;;  %vm453_vm10 = vcmp.eq.f32.partialorder %v431_v34, 0.0 }
  0xb8   :  { %v436_v38 = vsub.f32 1.5, %v435_v35 }
  0xba   :  { %v437_v40 = vmul.f32 %v646_v27, %v436_v38 }
  0xbc   :  { %v438_v42 = vmul.f32 %v437_v40, %v430_v13 }
  0xbd   :  { %v648_v45 = vpop.eup %647 }
  0xbe   :  { %v440_v48 = vsel %vm439_vm3, %v430_v13, %v438_v42  ;;  %v445_v49 = vmul.f32 %v648_v45, %v431_v34 }
  0xbf   :  { %v443_v50 = vsel %vm441_vm5, %v442_v46, %v440_v48 }
  0xc0   :  { %v516_v44 = vsel %vm495_vm4, %v500_v47, %v443_v50  ;;  %v446_v52 = vmul.f32 %v648_v45, %v445_v49 }
  0xc1   :  { %v520_v54 = vsel %vm519_vm6, %v516_v44, -inf }
  0xc2   :  { %521 = vmax.xlane.f32.xlu0 %v520_v54  ;;  %v447_v56 = vmul.f32 0.5, %v446_v52 }
  0xc4   :  { %v448_v58 = vsub.f32 1.5, %v447_v56 }
  0xc6   :  { %v449_v61 = vmul.f32 %v648_v45, %v448_v58 }
  0xc8   :  { %v450_v63 = vmul.f32 %v449_v61, %v431_v34 }
  0xca   :  { %v452_v1 = vsel %vm451_vm9, %v431_v34, %v450_v63  ;;  %v556_v34 = vld [vmem:[#allocation3] sm:$0x3] }
  0xcb   :  { %v455_v3 = vsel %vm453_vm10, %v454_v0, %v452_v1 }
  0xcc   :  { %v517_v4 = vsel %vm495_vm4, %v501_v2, %v455_v3 }
  0xcd   :  { %v523_v5 = vsel %vm519_vm6, %v517_v4, -inf }
  0xce   :  { %524 = vmax.xlane.f32.xlu1 %v523_v5 }
 0x135   :  { %v522_v7 = vpop.xlane.xlu0 %521 }
 0x136   :  { %v528_v9 = vperm.slane %v522_v7, %v809_v51 }
 0x141   :  { %v525_v8 = vpop.xlane.xlu1 %524 }
 0x142   :  { %v529_v11 = vperm.slane %v525_v8, %v809_v51 }
 0x144   :  { %v530_v12 = vsel %vm403_vm12, %v529_v11, %v528_v9 }
 0x145   :  { %v532_v13 = vmax.f32 %v518_v10, %v530_v12 }
 0x147   :  { %v533_v14 = vsub.f32 %v518_v10, %v532_v13  ;;  %591 = vst.msk [vmem:[#allocation2] sm:$0x3] %vm66_vm11, %v532_v13  ;;  %v543_v15 = vperm.slane %v532_v13, 1  ;;  %v536_v16 = vperm.slane %v532_v13, 0 }
 0x149   :  { %548 = vperm.xlu0 %640, %v543_v15   ;;  %541 = vperm.xlu2 %639, %v536_v16   ;;  %v534_v31 = vmul.f32 1.442695, %v533_v14 }
 0x1a3   :  { %v542_v17 = vpop.permute.xlu2 %541 }
 0x1a4   :  { %v550_v18 = vsub.f32 %v516_v44, %v542_v17 }
 0x1a6   :  { %v552_v19 = vmul.f32 1.442695, %v550_v18 }
 0x1a8   :  { %649 = vpow2.f32 %v552_v19 }
 0x1ae   :  { %v650_v20 = vpop.eup %649 }
 0x1af   :  { %v558_v21 = vsel %vm519_vm6, %v650_v20, 0.0  ;;  %v575_v29 = vsel %vm495_vm4, %v650_v20, 0.0 }
 0x1b0   :  { %559 = vadd.xlane.f32.xlu1 %v558_v21  ;;  %v577_v30 = vsel %vm519_vm6, %v575_v29, 0.0 }
 0x1bb   :  { %v549_v22 = vpop.permute.xlu0 %548 }
 0x1bc   :  { %v551_v23 = vsub.f32 %v517_v4, %v549_v22 }
 0x1be   :  { %v554_v24 = vmul.f32 1.442695, %v551_v23 }
 0x1c0   :  { %651 = vpow2.f32 %v554_v24 }
 0x1c1   :  { %653 = vpow2.f32 %v534_v31 }
 0x1c6   :  { %v652_v25 = vpop.eup %651 }
 0x1c7   :  { %v561_v26 = vsel %vm519_vm6, %v652_v25, 0.0  ;;  %v576_v27 = vsel %vm495_vm4, %v652_v25, 0.0  ;;  %v654_v33 = vpop.eup %653 }
 0x1c8   :  { %562 = vadd.xlane.f32.xlu1 %v561_v26  ;;  %v580_v28 = vsel %vm519_vm6, %v576_v27, 0.0  ;;  %v557_v38 = vmul.f32 %v654_v33, %v556_v34  ;;  %v574_v46 = vmul.f32 %v654_v33, %v573_v41 }
 0x1c9   :  { %581 = vadd.xlane.f32.xlu2 %v580_v28 }
 0x1d0   :  { %578 = vadd.xlane.f32.xlu1 %v577_v30 }
 0x223   :  { %v560_v32 = vpop.xlane.xlu1 %559 }
 0x224   :  { %v566_v36 = vperm.slane %v560_v32, %v809_v51 }
 0x23b   :  { %v563_v35 = vpop.xlane.xlu1 %562 }
 0x23c   :  { %v567_v37 = vperm.slane %v563_v35, %v809_v51  ;;  %v582_v55 = vpop.xlane.xlu2 %581 }
 0x23d   :  { %v586_v43 = vperm.slane %v582_v55, %v809_v51 }
 0x23e   :  { %v568_v39 = vsel %vm403_vm12, %v567_v37, %v566_v36 }
 0x23f   :  { %v570_v40 = vadd.f32 %v568_v39, %v557_v38 }
 0x241   :  { %572 = vst.msk [vmem:[#allocation3] sm:$0x3] %vm66_vm11, %v570_v40 }
 0x243   :  { %v579_v42 = vpop.xlane.xlu1 %578 }
 0x244   :  { %v585_v45 = vperm.slane %v579_v42, %v809_v51 }
 0x246   :  { %v587_v47 = vsel %vm403_vm12, %v586_v43, %v585_v45 }
 0x247   :  { %v589_v48 = vadd.f32 %v587_v47, %v574_v46 }
 0x248   :  { %v596_v49 = vld [vmem:[#allocation3] sm:$0x3] }
 0x249   :  { %590 = vst.msk [vmem:[#allocation4] sm:$0x3] %vm66_vm11, %v589_v48  ;;  %655 = vrcp.f32 %v596_v49  ;;  %v608_v53 = vand.u32 2147483648, %v596_v49  ;;  %v606_v56 = vand.u32 2147483647, %v596_v49  ;;  %vm602_vm14 = vweird.f32 %v596_v49 }
 0x24b   :  { %v609_v58 = vor.u32 1.1754944e-38, %v608_v53  ;;  %vm607_vm0 = vcmp.eq.f32.partialorder %v606_v56, 8.507059e+37 }
 0x24f   :  { %v656_v50 = vpop.eup %655 }
 0x250   :  { %v598_v44 = vmul.f32 %v656_v50, %v596_v49  ;;  %vm603_vm13 = vweird.f32 %v656_v50  ;;  %v595_v59 = vld [vmem:[#allocation4] sm:$0x3] }
 0x251   :  { %vm604_vm15 = vmor %vm602_vm14, %vm603_vm13 }
 0x252   :  { %v599_v52 = vsub.f32 1.0, %v598_v44 }
 0x254   :  { %v600_v54 = vmul.f32 %v656_v50, %v599_v52 }
 0x256   :  { %v601_v57 = vadd.f32 %v656_v50, %v600_v54 }
 0x258   :  { %v605_v51 = vsel %vm604_vm15, %v656_v50, %v601_v57 }
 0x259   :  { %v610_v61 = vsel %vm607_vm0, %v609_v58, %v605_v51 }
 0x25a   :  { %v611_v62 = vmul.f32 %v610_v61, %v595_v59 }
 0x25c   :  { %612 = vst.msk [vmem:[#allocation11] sm:$0x3] %vm66_vm11, %v611_v62 }
 0x25d   :  { %623 = dma.vmem_to_hbm [thread:$0]  %s619_s2, 32, %s621_s30, [#allocation7]  }
 0x25e   :  { %757 = dma.done.wait [#allocation7], 32  }
 0x25f   :  { %758 = vsyncadd [#allocation7], 4294967264 }
 0x260   :  { %628 = vsyncpa [#allocation6], 1 }
 0x261   :  { %629 = vsyncpa [#allocation9], 1 }
 0x262   :  { %630 = vsyncpa [#allocation7], 1 }

</bundles_post_ra>
